<compile_context>
chip_gen: v7x
topology: tpu7x:2x2x1
jax: 0.10.0
libtpu: 0.0.40
codegen_flags: <defaults>
</compile_context>

<pallas_src>
import jax
import jax.numpy as jnp
import numpy as np
from jax.experimental import pallas as pl
from jax.experimental.pallas import tpu as pltpu


def _pick_time_block(T, max_tt=64):
    """Largest divisor of T that is <= max_tt (timesteps processed per grid step)."""
    tt = min(T, max_tt)
    while T % tt:
        tt -= 1
    return tt


def _make_rnn_kernel(num_layers, TT):
    """Ref order:
       xp_ref   (TT, B, H)   time-major layer-0 pre-projection (bias already added)
       w0_hh    (H, H)       layer-0 recurrent weight (pre-transposed)
       per layer l=1..L-1: w_cat_l (2H, H), b_l (1, H)
       out_ref  (B, H)       last-layer hidden at the last timestep
       h_ref    (L, B, H)    VMEM scratch carrying hidden state across time blocks
    """
    def kernel(*refs):
        xp_ref = refs[0]
        w0_hh_ref = refs[1]
        layer_refs = refs[2:2 + 2 * (num_layers - 1)]
        out_ref = refs[2 + 2 * (num_layers - 1)]
        h_ref = refs[3 + 2 * (num_layers - 1)]

        tb = pl.program_id(0)

        # h0 = zeros, matching torch.zeros(num_layers, B, H).
        @pl.when(tb == 0)
        def _():
            h_ref[...] = jnp.zeros_like(h_ref)

        # Load hidden state + weights once per block (not per timestep).
        hs = [h_ref[l] for l in range(num_layers)]
        w0_hh = w0_hh_ref[...]
        ws = [(layer_refs[2 * i][...], layer_refs[2 * i + 1][...])
              for i in range(num_layers - 1)]

        inp = hs[num_layers - 1]
        # Statically-unrolled time loop (TT is small and compile-time constant,
        # giving the LLO scheduler full visibility across timesteps).
        for t in range(TT):
            # Layer 0: input projection hoisted -> only the recurrent matmul sits
            # on the serial critical path.
            h0 = jnp.tanh(
                xp_ref[t]
                + jnp.dot(hs[0], w0_hh, preferred_element_type=jnp.float32))
            hs[0] = h0
            inp = h0
            # Layers >= 1: single fused matmul per layer (concat along lanes).
            for i in range(num_layers - 1):
                w_cat, b = ws[i]
                zh = jnp.concatenate([inp, hs[i + 1]], axis=-1)  # (B, 2H)
                h_new = jnp.tanh(
                    jnp.dot(zh, w_cat, preferred_element_type=jnp.float32) + b)
                hs[i + 1] = h_new
                inp = h_new

        # Write carried state back once per block.
        for l in range(num_layers):
            h_ref[l] = hs[l]
        # Output block is resident across the whole grid; the last block's write
        # wins, which is exactly out[:, -1, :] of the last layer.
        out_ref[...] = inp

    return kernel


def rnn_forward(x, params, *, max_time_block=64):
    """x: (B, T, C_in) float32 (batch_first). Returns (B, output_channels) float32."""
    B, T, C = x.shape
    num_layers = len(params["rnn"])
    H = params["rnn"][0]["w_hh"].shape[0]

    x = x.astype(jnp.float32)

    # --- Hoisted layer-0 input projection: one big GEMM over all timesteps. ---
    lp0 = params["rnn"][0]
    b0 = (lp0["b_ih"] + lp0["b_hh"]).astype(jnp.float32)          # (H,)
    w0_ih_t = lp0["w_ih"].T.astype(jnp.float32)                   # (C, H)
    xp = x.reshape(B * T, C) @ w0_ih_t + b0                       # (B*T, H)
    xp = xp.reshape(B, T, H).transpose(1, 0, 2)                   # (T, B, H) time-major

    TT = _pick_time_block(T, max_time_block)
    grid = (T // TT,)

    flat_inputs = [xp, lp0["w_hh"].T.astype(jnp.float32)]
    in_specs = [
        pl.BlockSpec((TT, B, H), lambda tb: (tb, 0, 0)),
        pl.BlockSpec((H, H), lambda tb: (0, 0)),
    ]
    for lp in params["rnn"][1:]:
        # Fused [W_ih^T; W_hh^T] and pre-summed bias.
        w_cat = jnp.concatenate(
            [lp["w_ih"].T, lp["w_hh"].T], axis=0).astype(jnp.float32)   # (2H, H)
        b = (lp["b_ih"] + lp["b_hh"]).reshape(1, H).astype(jnp.float32)  # (1, H)
        flat_inputs += [w_cat, b]
        in_specs += [
            pl.BlockSpec((2 * H, H), lambda tb: (0, 0)),
            pl.BlockSpec((1, H), lambda tb: (0, 0)),
        ]

    kernel = _make_rnn_kernel(num_layers, TT)

    h_last = pl.pallas_call(
        kernel,
        out_shape=jax.ShapeDtypeStruct((B, H), jnp.float32),
        grid_spec=pltpu.PrefetchScalarGridSpec(
            num_scalar_prefetch=0,
            grid=grid,
            in_specs=in_specs,
            out_specs=pl.BlockSpec((B, H), lambda tb: (0, 0)),
            scratch_shapes=[pltpu.VMEM((num_layers, B, H), jnp.float32)],
        ),
        compiler_params=pltpu.CompilerParams(
            dimension_semantics=("arbitrary",)),  # serial time recurrence
    )(*flat_inputs)

    # Final Linear outside the kernel (avoids a lane-sparse (B, O) kernel output).
    w_lin = params["linear"]["w"].astype(jnp.float32)
    b_lin = params["linear"]["b"].astype(jnp.float32)
    return h_last @ w_lin.T + b_lin


def init_params(key, input_channels, hidden_channels, num_layers, output_channels):
    """Deterministic init, same shapes as torch.nn.RNN + torch.nn.Linear."""
    params = {"rnn": [], "linear": {}}
    k = 1.0 / np.sqrt(hidden_channels)
    for l in range(num_layers):
        c_in = input_channels if l == 0 else hidden_channels
        key, k1, k2, k3, k4 = jax.random.split(key, 5)
        params["rnn"].append({
            "w_ih": jax.random.uniform(k1, (hidden_channels, c_in), jnp.float32, -k, k),
            "w_hh": jax.random.uniform(k2, (hidden_channels, hidden_channels), jnp.float32, -k, k),
            "b_ih": jax.random.uniform(k3, (hidden_channels,), jnp.float32, -k, k),
            "b_hh": jax.random.uniform(k4, (hidden_channels,), jnp.float32, -k, k),
        })
    key, k1, k2 = jax.random.split(key, 3)
    params["linear"] = {
        "w": jax.random.uniform(k1, (output_channels, hidden_channels), jnp.float32, -k, k),
        "b": jax.random.uniform(k2, (output_channels,), jnp.float32, -k, k),
    }
    return params


def rnn_reference(x, params):
    """Pure-JAX reference replicating torch.nn.RNN (tanh) + Linear forward."""
    B, T, _ = x.shape
    num_layers = len(params["rnn"])
    H = params["rnn"][0]["w_hh"].shape[0]
    h = [jnp.zeros((B, H), jnp.float32) for _ in range(num_layers)]
    inp = None
    for t in range(T):
        inp = x[:, t, :]
        for l, lp in enumerate(params["rnn"]):
            h[l] = jnp.tanh(inp @ lp["w_ih"].T + lp["b_ih"]
                            + h[l] @ lp["w_hh"].T + lp["b_hh"])
            inp = h[l]
    return inp @ params["linear"]["w"].T + params["linear"]["b"]


if __name__ == "__main__":
    B, T = 2, 8
    input_channels, hidden_channels, num_layers, output_channels = 4, 32, 2, 6

    key = jax.random.PRNGKey(0)
    key, kx = jax.random.split(key)
    x = jax.random.normal(kx, (B, T, input_channels), jnp.float32)
    # `times` argument of the torch module is unused in its forward pass.
    params = init_params(key, input_channels, hidden_channels, num_layers,
                         output_channels)

    out = rnn_forward(x, params)
    out = jax.block_until_ready(out)

    ref = rnn_reference(x, params)
    if not np.allclose(np.asarray(out), np.asarray(ref), rtol=1e-5, atol=1e-5):
        raise AssertionError("Pallas RNN kernel does not match JAX reference")

    print("KERNEL_OK")
</pallas_src>

<mosaic_0001>
module attributes {stable_mosaic.version = 11 : i64} {
  func.func @kernel(%arg0: i32, %arg1: memref<8x2x32xf32, #tpu.memory_space<vmem>>, %arg2: memref<32x32xf32, #tpu.memory_space<vmem>>, %arg3: memref<64x32xf32, #tpu.memory_space<vmem>>, %arg4: memref<1x32xf32, #tpu.memory_space<vmem>>, %arg5: memref<2x32xf32, #tpu.memory_space<vmem>>, %arg6: memref<2x2x32xf32, #tpu.memory_space<vmem>>) attributes {dimension_semantics = [#tpu.dimension_semantics<arbitrary>], iteration_bounds = array<i64: 1>, scalar_prefetch = 0 : i64, scratch_operands = 1 : i64, tpu.core_type = #tpu.core_type<tc>, window_params = [{transform_indices = @transform_0, window_bounds = array<i64: 8, 2, 32>}, {pipeline_mode = #tpu.pipeline_mode<synchronous>, transform_indices = @transform_1, window_bounds = array<i64: 32, 32>}, {pipeline_mode = #tpu.pipeline_mode<synchronous>, transform_indices = @transform_2, window_bounds = array<i64: 64, 32>}, {pipeline_mode = #tpu.pipeline_mode<synchronous>, transform_indices = @transform_3, window_bounds = array<i64: 1, 32>}, {pipeline_mode = #tpu.pipeline_mode<synchronous>, transform_indices = @transform_4, window_bounds = array<i64: 2, 32>}]} {
    %c0_i32 = arith.constant 0 : i32
    %0 = arith.cmpi eq, %arg0, %c0_i32 : i32
    %1 = arith.extui %0 : i1 to i32
    %c0_i32_0 = arith.constant 0 : i32
    %2 = arith.cmpi ne, %1, %c0_i32_0 : i32
    scf.if %2 {
      %cst_52 = arith.constant 0.000000e+00 : f32
      %97 = vector.broadcast %cst_52 : f32 to vector<2x2x32xf32>
      %c0_53 = arith.constant 0 : index
      %c0_54 = arith.constant 0 : index
      %c0_55 = arith.constant 0 : index
      %98 = vector.load %arg6[%c0_53, %c0_54, %c0_55] : memref<2x2x32xf32, #tpu.memory_space<vmem>>, vector<2x2x32xf32>
      tpu.vector_store %arg6[%c0_53, %c0_54, %c0_55], %97 {strides = array<i32>} : memref<2x2x32xf32, #tpu.memory_space<vmem>>, vector<2x2x32xf32>,
    } else {
    }
    %c0 = arith.constant 0 : index
    %c0_1 = arith.constant 0 : index
    %c0_2 = arith.constant 0 : index
    %3 = vector.load %arg6[%c0, %c0_1, %c0_2] : memref<2x2x32xf32, #tpu.memory_space<vmem>>, vector<1x2x32xf32>
    %4 = vector.shape_cast %3 : vector<1x2x32xf32> to vector<2x32xf32>
    %c1 = arith.constant 1 : index
    %c0_3 = arith.constant 0 : index
    %c0_4 = arith.constant 0 : index
    %5 = vector.load %arg6[%c1, %c0_3, %c0_4] : memref<2x2x32xf32, #tpu.memory_space<vmem>>, vector<1x2x32xf32>
    %6 = vector.shape_cast %5 : vector<1x2x32xf32> to vector<2x32xf32>
    %c0_5 = arith.constant 0 : index
    %c0_6 = arith.constant 0 : index
    %7 = vector.load %arg2[%c0_5, %c0_6] : memref<32x32xf32, #tpu.memory_space<vmem>>, vector<32x32xf32>
    %c0_7 = arith.constant 0 : index
    %c0_8 = arith.constant 0 : index
    %8 = vector.load %arg3[%c0_7, %c0_8] : memref<64x32xf32, #tpu.memory_space<vmem>>, vector<64x32xf32>
    %c0_9 = arith.constant 0 : index
    %c0_10 = arith.constant 0 : index
    %9 = vector.load %arg4[%c0_9, %c0_10] : memref<1x32xf32, #tpu.memory_space<vmem>>, vector<1x32xf32>
    %c0_11 = arith.constant 0 : index
    %c0_12 = arith.constant 0 : index
    %c0_13 = arith.constant 0 : index
    %10 = vector.load %arg1[%c0_11, %c0_12, %c0_13] : memref<8x2x32xf32, #tpu.memory_space<vmem>>, vector<1x2x32xf32>
    %11 = vector.shape_cast %10 : vector<1x2x32xf32> to vector<2x32xf32>
    %cst = arith.constant dense<0.000000e+00> : vector<2x32xf32>
    %12 = tpu.matmul %4, %7, %cst {dimension_numbers = #tpu.dot_dimension_numbers<[1], [0], [0], [1], [0, 0, 1, 1], [], []>} : vector<2x32xf32>, vector<32x32xf32>, vector<2x32xf32> -> vector<2x32xf32>
    %13 = arith.addf %11, %12 : vector<2x32xf32>
    %14 = math.tanh %13 : vector<2x32xf32>
    %15 = tpu.concatenate %14, %6 in 1 : vector<2x32xf32>, vector<2x32xf32> -> vector<2x64xf32>
    %cst_14 = arith.constant dense<0.000000e+00> : vector<2x32xf32>
    %16 = tpu.matmul %15, %8, %cst_14 {dimension_numbers = #tpu.dot_dimension_numbers<[1], [0], [0], [1], [0, 0, 1, 1], [], []>} : vector<2x64xf32>, vector<64x32xf32>, vector<2x32xf32> -> vector<2x32xf32>
    %17 = vector.broadcast %9 : vector<1x32xf32> to vector<2x32xf32>
    %18 = arith.addf %16, %17 : vector<2x32xf32>
    %19 = math.tanh %18 : vector<2x32xf32>
    %c1_15 = arith.constant 1 : index
    %c0_16 = arith.constant 0 : index
    %c0_17 = arith.constant 0 : index
    %20 = vector.load %arg1[%c1_15, %c0_16, %c0_17] : memref<8x2x32xf32, #tpu.memory_space<vmem>>, vector<1x2x32xf32>
    %21 = vector.shape_cast %20 : vector<1x2x32xf32> to vector<2x32xf32>
    %cst_18 = arith.constant dense<0.000000e+00> : vector<2x32xf32>
    %22 = tpu.matmul %14, %7, %cst_18 {dimension_numbers = #tpu.dot_dimension_numbers<[1], [0], [0], [1], [0, 0, 1, 1], [], []>} : vector<2x32xf32>, vector<32x32xf32>, vector<2x32xf32> -> vector<2x32xf32>
    %23 = arith.addf %21, %22 : vector<2x32xf32>
    %24 = math.tanh %23 : vector<2x32xf32>
    %25 = tpu.concatenate %24, %19 in 1 : vector<2x32xf32>, vector<2x32xf32> -> vector<2x64xf32>
    %cst_19 = arith.constant dense<0.000000e+00> : vector<2x32xf32>
    %26 = tpu.matmul %25, %8, %cst_19 {dimension_numbers = #tpu.dot_dimension_numbers<[1], [0], [0], [1], [0, 0, 1, 1], [], []>} : vector<2x64xf32>, vector<64x32xf32>, vector<2x32xf32> -> vector<2x32xf32>
    %27 = vector.broadcast %9 : vector<1x32xf32> to vector<2x32xf32>
    %28 = arith.addf %26, %27 : vector<2x32xf32>
    %29 = math.tanh %28 : vector<2x32xf32>
    %c2 = arith.constant 2 : index
    %c0_20 = arith.constant 0 : index
    %c0_21 = arith.constant 0 : index
    %30 = vector.load %arg1[%c2, %c0_20, %c0_21] : memref<8x2x32xf32, #tpu.memory_space<vmem>>, vector<1x2x32xf32>
    %31 = vector.shape_cast %30 : vector<1x2x32xf32> to vector<2x32xf32>
    %cst_22 = arith.constant dense<0.000000e+00> : vector<2x32xf32>
    %32 = tpu.matmul %24, %7, %cst_22 {dimension_numbers = #tpu.dot_dimension_numbers<[1], [0], [0], [1], [0, 0, 1, 1], [], []>} : vector<2x32xf32>, vector<32x32xf32>, vector<2x32xf32> -> vector<2x32xf32>
    %33 = arith.addf %31, %32 : vector<2x32xf32>
    %34 = math.tanh %33 : vector<2x32xf32>
    %35 = tpu.concatenate %34, %29 in 1 : vector<2x32xf32>, vector<2x32xf32> -> vector<2x64xf32>
    %cst_23 = arith.constant dense<0.000000e+00> : vector<2x32xf32>
    %36 = tpu.matmul %35, %8, %cst_23 {dimension_numbers = #tpu.dot_dimension_numbers<[1], [0], [0], [1], [0, 0, 1, 1], [], []>} : vector<2x64xf32>, vector<64x32xf32>, vector<2x32xf32> -> vector<2x32xf32>
    %37 = vector.broadcast %9 : vector<1x32xf32> to vector<2x32xf32>
    %38 = arith.addf %36, %37 : vector<2x32xf32>
    %39 = math.tanh %38 : vector<2x32xf32>
    %c3 = arith.constant 3 : index
    %c0_24 = arith.constant 0 : index
    %c0_25 = arith.constant 0 : index
    %40 = vector.load %arg1[%c3, %c0_24, %c0_25] : memref<8x2x32xf32, #tpu.memory_space<vmem>>, vector<1x2x32xf32>
    %41 = vector.shape_cast %40 : vector<1x2x32xf32> to vector<2x32xf32>
    %cst_26 = arith.constant dense<0.000000e+00> : vector<2x32xf32>
    %42 = tpu.matmul %34, %7, %cst_26 {dimension_numbers = #tpu.dot_dimension_numbers<[1], [0], [0], [1], [0, 0, 1, 1], [], []>} : vector<2x32xf32>, vector<32x32xf32>, vector<2x32xf32> -> vector<2x32xf32>
    %43 = arith.addf %41, %42 : vector<2x32xf32>
    %44 = math.tanh %43 : vector<2x32xf32>
    %45 = tpu.concatenate %44, %39 in 1 : vector<2x32xf32>, vector<2x32xf32> -> vector<2x64xf32>
    %cst_27 = arith.constant dense<0.000000e+00> : vector<2x32xf32>
    %46 = tpu.matmul %45, %8, %cst_27 {dimension_numbers = #tpu.dot_dimension_numbers<[1], [0], [0], [1], [0, 0, 1, 1], [], []>} : vector<2x64xf32>, vector<64x32xf32>, vector<2x32xf32> -> vector<2x32xf32>
    %47 = vector.broadcast %9 : vector<1x32xf32> to vector<2x32xf32>
    %48 = arith.addf %46, %47 : vector<2x32xf32>
    %49 = math.tanh %48 : vector<2x32xf32>
    %c4 = arith.constant 4 : index
    %c0_28 = arith.constant 0 : index
    %c0_29 = arith.constant 0 : index
    %50 = vector.load %arg1[%c4, %c0_28, %c0_29] : memref<8x2x32xf32, #tpu.memory_space<vmem>>, vector<1x2x32xf32>
    %51 = vector.shape_cast %50 : vector<1x2x32xf32> to vector<2x32xf32>
    %cst_30 = arith.constant dense<0.000000e+00> : vector<2x32xf32>
    %52 = tpu.matmul %44, %7, %cst_30 {dimension_numbers = #tpu.dot_dimension_numbers<[1], [0], [0], [1], [0, 0, 1, 1], [], []>} : vector<2x32xf32>, vector<32x32xf32>, vector<2x32xf32> -> vector<2x32xf32>
    %53 = arith.addf %51, %52 : vector<2x32xf32>
    %54 = math.tanh %53 : vector<2x32xf32>
    %55 = tpu.concatenate %54, %49 in 1 : vector<2x32xf32>, vector<2x32xf32> -> vector<2x64xf32>
    %cst_31 = arith.constant dense<0.000000e+00> : vector<2x32xf32>
    %56 = tpu.matmul %55, %8, %cst_31 {dimension_numbers = #tpu.dot_dimension_numbers<[1], [0], [0], [1], [0, 0, 1, 1], [], []>} : vector<2x64xf32>, vector<64x32xf32>, vector<2x32xf32> -> vector<2x32xf32>
    %57 = vector.broadcast %9 : vector<1x32xf32> to vector<2x32xf32>
    %58 = arith.addf %56, %57 : vector<2x32xf32>
    %59 = math.tanh %58 : vector<2x32xf32>
    %c5 = arith.constant 5 : index
    %c0_32 = arith.constant 0 : index
    %c0_33 = arith.constant 0 : index
    %60 = vector.load %arg1[%c5, %c0_32, %c0_33] : memref<8x2x32xf32, #tpu.memory_space<vmem>>, vector<1x2x32xf32>
    %61 = vector.shape_cast %60 : vector<1x2x32xf32> to vector<2x32xf32>
    %cst_34 = arith.constant dense<0.000000e+00> : vector<2x32xf32>
    %62 = tpu.matmul %54, %7, %cst_34 {dimension_numbers = #tpu.dot_dimension_numbers<[1], [0], [0], [1], [0, 0, 1, 1], [], []>} : vector<2x32xf32>, vector<32x32xf32>, vector<2x32xf32> -> vector<2x32xf32>
    %63 = arith.addf %61, %62 : vector<2x32xf32>
    %64 = math.tanh %63 : vector<2x32xf32>
    %65 = tpu.concatenate %64, %59 in 1 : vector<2x32xf32>, vector<2x32xf32> -> vector<2x64xf32>
    %cst_35 = arith.constant dense<0.000000e+00> : vector<2x32xf32>
    %66 = tpu.matmul %65, %8, %cst_35 {dimension_numbers = #tpu.dot_dimension_numbers<[1], [0], [0], [1], [0, 0, 1, 1], [], []>} : vector<2x64xf32>, vector<64x32xf32>, vector<2x32xf32> -> vector<2x32xf32>
    %67 = vector.broadcast %9 : vector<1x32xf32> to vector<2x32xf32>
    %68 = arith.addf %66, %67 : vector<2x32xf32>
    %69 = math.tanh %68 : vector<2x32xf32>
    %c6 = arith.constant 6 : index
    %c0_36 = arith.constant 0 : index
    %c0_37 = arith.constant 0 : index
    %70 = vector.load %arg1[%c6, %c0_36, %c0_37] : memref<8x2x32xf32, #tpu.memory_space<vmem>>, vector<1x2x32xf32>
    %71 = vector.shape_cast %70 : vector<1x2x32xf32> to vector<2x32xf32>
    %cst_38 = arith.constant dense<0.000000e+00> : vector<2x32xf32>
    %72 = tpu.matmul %64, %7, %cst_38 {dimension_numbers = #tpu.dot_dimension_numbers<[1], [0], [0], [1], [0, 0, 1, 1], [], []>} : vector<2x32xf32>, vector<32x32xf32>, vector<2x32xf32> -> vector<2x32xf32>
    %73 = arith.addf %71, %72 : vector<2x32xf32>
    %74 = math.tanh %73 : vector<2x32xf32>
    %75 = tpu.concatenate %74, %69 in 1 : vector<2x32xf32>, vector<2x32xf32> -> vector<2x64xf32>
    %cst_39 = arith.constant dense<0.000000e+00> : vector<2x32xf32>
    %76 = tpu.matmul %75, %8, %cst_39 {dimension_numbers = #tpu.dot_dimension_numbers<[1], [0], [0], [1], [0, 0, 1, 1], [], []>} : vector<2x64xf32>, vector<64x32xf32>, vector<2x32xf32> -> vector<2x32xf32>
    %77 = vector.broadcast %9 : vector<1x32xf32> to vector<2x32xf32>
    %78 = arith.addf %76, %77 : vector<2x32xf32>
    %79 = math.tanh %78 : vector<2x32xf32>
    %c7 = arith.constant 7 : index
    %c0_40 = arith.constant 0 : index
    %c0_41 = arith.constant 0 : index
    %80 = vector.load %arg1[%c7, %c0_40, %c0_41] : memref<8x2x32xf32, #tpu.memory_space<vmem>>, vector<1x2x32xf32>
    %81 = vector.shape_cast %80 : vector<1x2x32xf32> to vector<2x32xf32>
    %cst_42 = arith.constant dense<0.000000e+00> : vector<2x32xf32>
    %82 = tpu.matmul %74, %7, %cst_42 {dimension_numbers = #tpu.dot_dimension_numbers<[1], [0], [0], [1], [0, 0, 1, 1], [], []>} : vector<2x32xf32>, vector<32x32xf32>, vector<2x32xf32> -> vector<2x32xf32>
    %83 = arith.addf %81, %82 : vector<2x32xf32>
    %84 = math.tanh %83 : vector<2x32xf32>
    %85 = tpu.concatenate %84, %79 in 1 : vector<2x32xf32>, vector<2x32xf32> -> vector<2x64xf32>
    %cst_43 = arith.constant dense<0.000000e+00> : vector<2x32xf32>
    %86 = tpu.matmul %85, %8, %cst_43 {dimension_numbers = #tpu.dot_dimension_numbers<[1], [0], [0], [1], [0, 0, 1, 1], [], []>} : vector<2x64xf32>, vector<64x32xf32>, vector<2x32xf32> -> vector<2x32xf32>
    %87 = vector.broadcast %9 : vector<1x32xf32> to vector<2x32xf32>
    %88 = arith.addf %86, %87 : vector<2x32xf32>
    %89 = math.tanh %88 : vector<2x32xf32>
    %c0_44 = arith.constant 0 : index
    %c0_45 = arith.constant 0 : index
    %c0_46 = arith.constant 0 : index
    %90 = vector.load %arg6[%c0_44, %c0_45, %c0_46] : memref<2x2x32xf32, #tpu.memory_space<vmem>>, vector<1x2x32xf32>
    %91 = vector.shape_cast %90 : vector<1x2x32xf32> to vector<2x32xf32>
    %92 = vector.shape_cast %84 : vector<2x32xf32> to vector<1x2x32xf32>
    tpu.vector_store %arg6[%c0_44, %c0_45, %c0_46], %92 {strides = array<i32>} : memref<2x2x32xf32, #tpu.memory_space<vmem>>, vector<1x2x32xf32>,
    %c1_47 = arith.constant 1 : index
    %c0_48 = arith.constant 0 : index
    %c0_49 = arith.constant 0 : index
    %93 = vector.load %arg6[%c1_47, %c0_48, %c0_49] : memref<2x2x32xf32, #tpu.memory_space<vmem>>, vector<1x2x32xf32>
    %94 = vector.shape_cast %93 : vector<1x2x32xf32> to vector<2x32xf32>
    %95 = vector.shape_cast %89 : vector<2x32xf32> to vector<1x2x32xf32>
    tpu.vector_store %arg6[%c1_47, %c0_48, %c0_49], %95 {strides = array<i32>} : memref<2x2x32xf32, #tpu.memory_space<vmem>>, vector<1x2x32xf32>,
    %c0_50 = arith.constant 0 : index
    %c0_51 = arith.constant 0 : index
    %96 = vector.load %arg5[%c0_50, %c0_51] : memref<2x32xf32, #tpu.memory_space<vmem>>, vector<2x32xf32>
    tpu.vector_store %arg5[%c0_50, %c0_51], %89 {strides = array<i32>} : memref<2x32xf32, #tpu.memory_space<vmem>>, vector<2x32xf32>,
    return
  }
  func.func @transform_0(%arg0: i32) -> (i32, i32, i32) {
    %c0_i32 = arith.constant 0 : i32
    %c0_i32_0 = arith.constant 0 : i32
    %c0_i32_1 = arith.constant 0 : i32
    return %arg0, %c0_i32, %c0_i32_0 : i32, i32, i32
  }
  func.func @transform_1(%arg0: i32) -> (i32, i32) {
    %c0_i32 = arith.constant 0 : i32
    %c0_i32_0 = arith.constant 0 : i32
    %c0_i32_1 = arith.constant 0 : i32
    return %c0_i32, %c0_i32_0 : i32, i32
  }
  func.func @transform_2(%arg0: i32) -> (i32, i32) {
    %c0_i32 = arith.constant 0 : i32
    %c0_i32_0 = arith.constant 0 : i32
    %c0_i32_1 = arith.constant 0 : i32
    return %c0_i32, %c0_i32_0 : i32, i32
  }
  func.func @transform_3(%arg0: i32) -> (i32, i32) {
    %c0_i32 = arith.constant 0 : i32
    %c0_i32_0 = arith.constant 0 : i32
    %c0_i32_1 = arith.constant 0 : i32
    return %c0_i32, %c0_i32_0 : i32, i32
  }
  func.func @transform_4(%arg0: i32) -> (i32, i32) {
    %c0_i32 = arith.constant 0 : i32
    %c0_i32_0 = arith.constant 0 : i32
    %c0_i32_1 = arith.constant 0 : i32
    return %c0_i32, %c0_i32_0 : i32, i32
  }
}

</mosaic_0001>

<bundles_post_ra>
// kernel: tpu_custom_call.1
= control target key start
LH: loop header
LB: loop body
LE: loop exit
PB: predicated region body
PF: predicated region fallthrough
CT: control target
= control target key end

     0   :  { %v1895_v3 = vmov 0.0|0.0   ;;  %vm1896_vm0 = vmmov 0   ;;  %v1897_v6 = vmov 0.0   ;;  %vm22_vm1 = vcmask 254976   ;;  %s2189_s0 = inlined_call_operand.vmem [shape: f32[8,2,32], index: 0, kind: input, shape index: {}]   ;;  %s2190_s1 = inlined_call_operand.vmem [shape: f32[32,32], index: 1, kind: input, shape index: {}]   ;;  %s2191_s2 = inlined_call_operand.vmem [shape: f32[64,32], index: 2, kind: input, shape index: {}]   ;;  %s2192_s3 = inlined_call_operand.vmem [shape: f32[1,32], index: 3, kind: input, shape index: {}]   ;;  %s2193_s4 = inlined_call_operand.hbm [shape: f32[2,32], index: 4, kind: output, shape index: {}]  }
   0x1   :  { %v28_v0 = vld [vmem:[%s2190_s1] sm:$0xff]  ;;  %v29_v1 = vld [vmem:[%s2190_s1 + $0x8] sm:$0xff]  ;;  %v30_v2 = vld [vmem:[%s2190_s1 + $0x10] sm:$0xff]  ;;  %1690 = vmatprep.subr.bf16.mxu1 %v1895_v3  ;;  %1458 = vmatprep.mubr.msk.f32.mxu1 %vm1896_vm0, %v1897_v6  ;;  %23 = vst.msk [vmem:[#allocation2] sm:$0x3] %vm22_vm1, %v1897_v6 }
   0x2   :  { %v1935_v4 = vpack.c.bf16 %v29_v1, %v28_v0  ;;  %v31_v5 = vld [vmem:[%s2190_s1 + $0x18] sm:$0xff]  ;;  %24 = vst.msk [vmem:[#allocation2 + $0x2] sm:$0x3] %vm22_vm1, %v1897_v6  ;;  %1708 = vmatprep.subr.bf16.mxu0 %v1895_v3  ;;  %1488 = vmatprep.mubr.msk.f32.mxu0 %vm1896_vm0, %v1897_v6 }
   0x3   :  { %9 = vsyncpa [#allocation4], 0  ;;  %v1950_v7 = vpack.c.bf16 %v31_v5, %v30_v2  ;;  %vm42_vm2 = vcmask 261120   ;;  %s1898_s1 = smov 32   ;;  %v32_v10 = vld [vmem:[%s2191_s2] sm:$0xff]  ;;  %v33_v11 = vld [vmem:[%s2191_s2 + $0x8] sm:$0xff] }
   0x4   :  { %1692 = vmatpush3.bf16.msra.mxu1 %v1935_v4  ;;  %1710 = vmatpush3.bf16.msra.mxu0 %v1935_v4  ;;  %v1969_v12 = vpack.c.bf16 %v33_v11, %v32_v10  ;;  %v34_v13 = vld [vmem:[%s2191_s2 + $0x10] sm:$0xff]  ;;  %v35_v14 = vld [vmem:[%s2191_s2 + $0x18] sm:$0xff]  ;;  %v36_v16 = vld [vmem:[%s2191_s2 + $0x20] sm:$0xff]  ;;  %vm129_vm3 = vcmask 523264  }
   0x5   :  { %1693 = vmatprep.subr.bf16.mxu1 %v1895_v3  ;;  %1711 = vmatprep.subr.bf16.mxu0 %v1895_v3  ;;  %v1979_v15 = vpack.c.bf16 %v35_v14, %v34_v13  ;;  %v37_v17 = vld [vmem:[%s2191_s2 + $0x28] sm:$0xff]  ;;  %v38_v19 = vld [vmem:[%s2191_s2 + $0x30] sm:$0xff]  ;;  %v39_v20 = vld [vmem:[%s2191_s2 + $0x38] sm:$0xff] }
   0x6   :  { %v1988_v18 = vpack.c.bf16 %v37_v17, %v36_v16  ;;  %v1998_v21 = vpack.c.bf16 %v39_v20, %v38_v19  ;;  %v41_v22 = vld [vmem:[%s2189_s0] sm:$0x3]  ;;  %v1317_v29 = vld [vmem:[%s2189_s0 + $0x2] sm:$0x3]  ;;  %v1320_v41 = vld [vmem:[%s2189_s0 + $0x4] sm:$0x3] }
   0x7   :  { %v2031_v30 = vld [vmem:[%s2192_s3] ss:$0 sm:$0xff]  ;;  %v1323_v52 = vld [vmem:[%s2189_s0 + $0x6] sm:$0x3]  ;;  %v1326_v63 = vld [vmem:[%s2189_s0 + $0x8] sm:$0x3] }
   0x8   :  { %1695 = vmatpush3.bf16.msra.mxu1 %v1950_v7  ;;  %1713 = vmatpush3.bf16.msra.mxu0 %v1950_v7  ;;  %v25_v8 = vld [vmem:[#allocation2] sm:$0x3]  ;;  %v1329_v16 = vld [vmem:[%s2189_s0 + $0xa] sm:$0x3] }
   0x9   :  { %1696 = vmatprep.subr.bf16.mxu1 %v1895_v3  ;;  %1714 = vmatprep.subr.bf16.mxu0 %v1895_v3  ;;  %v27_v9 = vld [vmem:[#allocation2 + $0x2] sm:$0x3] }
   0xa   :  { %119 = vrot.lane.b32.xlu0 %v27_v9, %s1898_s1 }
   0xb   :  { %1459 = vmatmul.mubr.msk.f32.vlgmr.msra.gmra.mrb[0].mxu1 %vm42_vm2, %v25_v8 }
   0xc   :  { %1477 = vmatprep.mubr.msk.f32.mxu1 %vm1896_vm0, %v1897_v6  ;;  %1698 = vmatpush3.bf16.msra.mxu1 %v1969_v12 }
   0xd   :  { %1699 = vmatprep.subr.bf16.mxu1 %v1895_v3 }
  0x10   :  { %1701 = vmatpush3.bf16.msra.mxu1 %v1979_v15 }
  0x11   :  { %1702 = vmatprep.subr.bf16.mxu1 %v1895_v3 }
  0x14   :  { %1704 = vmatpush3.bf16.msra.mxu1 %v1988_v18 }
  0x15   :  { %1705 = vmatprep.subr.bf16.mxu1 %v1895_v3 }
  0x18   :  { %1707 = vmatpush3.bf16.msra.mxu1 %v1998_v21 }
  0x19   :  { %1726 = vmatprep.subr.bf16.mxu1 %v1895_v3 }
  0x7c   :  { %v120_v26 = vpop.permute.xlu0 %119 }
  0xde   :  { %v112_v23 = vpop.f32.mrb[0].mxu1 }
  0xdf   :  { %v116_v24 = vadd.f32 %v112_v23, %v41_v22  ;;  %v1460_v25 = vpop.f32.mrb[1].mxu1 }
  0xe1   :  { %1839 = vtanh.f32 %v116_v24 }
  0xeb   :  { %v1840_v27 = vpop.eup %1839 }
  0xec   :  { %v122_v28 = vsel %vm42_vm2, %v1840_v27, %v120_v26  ;;  %1489 = vmatmul.mubr.msk.f32.vlgmr.msra.gmra.mrb[0].mxu0 %vm42_vm2, %v1840_v27 }
  0xed   :  { %1478 = vmatmul.mubr.msk.f32.vlgmr.msra.gmra.mrb[2].mxu1 %vm129_vm3, %v122_v28  ;;  %1716 = vmatpush3.bf16.msra.mxu0 %v1969_v12 }
  0xee   :  { %1728 = vmatpush3.bf16.msra.mxu1 %v1935_v4  ;;  %1518 = vmatprep.mubr.msk.f32.mxu1 %vm1896_vm0, %v1897_v6 }
  0xef   :  { %1729 = vmatprep.subr.bf16.mxu1 %v1895_v3  ;;  %1717 = vmatprep.subr.bf16.mxu0 %v1895_v3 }
  0xf0   :  { %1507 = vmatprep.mubr.msk.f32.mxu0 %vm1896_vm0, %v1897_v6 }
  0xf1   :  { %1719 = vmatpush3.bf16.msra.mxu0 %v1979_v15 }
  0xf2   :  { %1731 = vmatpush3.bf16.msra.mxu1 %v1950_v7  ;;  %1720 = vmatprep.subr.bf16.mxu0 %v1895_v3 }
  0xf3   :  { %1732 = vmatprep.subr.bf16.mxu1 %v1895_v3 }
  0xf5   :  { %1722 = vmatpush3.bf16.msra.mxu0 %v1988_v18 }
  0xf6   :  { %1723 = vmatprep.subr.bf16.mxu0 %v1895_v3 }
  0xf9   :  { %1725 = vmatpush3.bf16.msra.mxu0 %v1998_v21 }
  0xfa   :  { %1744 = vmatprep.subr.bf16.mxu0 %v1895_v3 }
 0x1bf   :  { %v275_v31 = vpop.f32.mrb[0].mxu0 }
 0x1c0   :  { %v279_v32 = vadd.f32 %v1317_v29, %v275_v31  ;;  %v199_v33 = vpop.f32.mrb[2].mxu1  ;;  %v1490_v34 = vpop.f32.mrb[1].mxu0  ;;  %v1332_v29 = vld [vmem:[%s2189_s0 + $0xc] sm:$0x3] }
 0x1c1   :  { %v200_v35 = vadd.f32 %v2031_v30, %v199_v33  ;;  %v1479_v36 = vpop.f32.mrb[3].mxu1 }
 0x1c2   :  { %1841 = vtanh.f32 %v279_v32 }
 0x1c3   :  { %1843 = vtanh.f32 %v200_v35 }
 0x1cc   :  { %v1842_v37 = vpop.eup %1841 }
 0x1cd   :  { %v1844_v38 = vpop.eup %1843  ;;  %1519 = vmatmul.mubr.msk.f32.vlgmr.msra.gmra.mrb[4].mxu1 %vm42_vm2, %v1842_v37 }
 0x1ce   :  { %282 = vrot.lane.b32.xlu0 %v1844_v38, %s1898_s1  ;;  %1734 = vmatpush3.bf16.msra.mxu1 %v1969_v12 }
 0x1cf   :  { %1735 = vmatprep.subr.bf16.mxu1 %v1895_v3  ;;  %1537 = vmatprep.mubr.msk.f32.mxu1 %vm1896_vm0, %v1897_v6 }
 0x1d2   :  { %1737 = vmatpush3.bf16.msra.mxu1 %v1979_v15 }
 0x1d3   :  { %1738 = vmatprep.subr.bf16.mxu1 %v1895_v3 }
 0x1d6   :  { %1740 = vmatpush3.bf16.msra.mxu1 %v1988_v18 }
 0x1d7   :  { %1741 = vmatprep.subr.bf16.mxu1 %v1895_v3 }
 0x1da   :  { %1743 = vmatpush3.bf16.msra.mxu1 %v1998_v21 }
 0x1db   :  { %1762 = vmatprep.subr.bf16.mxu1 %v1895_v3 }
 0x240   :  { %v283_v39 = vpop.permute.xlu0 %282 }
 0x241   :  { %v285_v40 = vsel %vm42_vm2, %v1842_v37, %v283_v39 }
 0x242   :  { %1508 = vmatmul.mubr.msk.f32.vlgmr.msra.gmra.mrb[2].mxu0 %vm129_vm3, %v285_v40 }
 0x243   :  { %1746 = vmatpush3.bf16.msra.mxu0 %v1935_v4  ;;  %1548 = vmatprep.mubr.msk.f32.mxu0 %vm1896_vm0, %v1897_v6 }
 0x244   :  { %1747 = vmatprep.subr.bf16.mxu0 %v1895_v3 }
 0x247   :  { %1749 = vmatpush3.bf16.msra.mxu0 %v1950_v7 }
 0x248   :  { %1750 = vmatprep.subr.bf16.mxu0 %v1895_v3 }
 0x2a0   :  { %v431_v42 = vpop.f32.mrb[4].mxu1 }
 0x2a1   :  { %v435_v43 = vadd.f32 %v1320_v41, %v431_v42  ;;  %v1520_v44 = vpop.f32.mrb[5].mxu1 }
 0x2a3   :  { %1845 = vtanh.f32 %v435_v43 }
 0x2ad   :  { %v1846_v45 = vpop.eup %1845 }
 0x2ae   :  { %1549 = vmatmul.mubr.msk.f32.vlgmr.msra.gmra.mrb[4].mxu0 %vm42_vm2, %v1846_v45 }
 0x2af   :  { %1752 = vmatpush3.bf16.msra.mxu0 %v1969_v12  ;;  %1567 = vmatprep.mubr.msk.f32.mxu0 %vm1896_vm0, %v1897_v6 }
 0x2b0   :  { %1753 = vmatprep.subr.bf16.mxu0 %v1895_v3 }
 0x2b3   :  { %1755 = vmatpush3.bf16.msra.mxu0 %v1979_v15 }
 0x2b4   :  { %1756 = vmatprep.subr.bf16.mxu0 %v1895_v3 }
 0x2b7   :  { %1758 = vmatpush3.bf16.msra.mxu0 %v1988_v18 }
 0x2b8   :  { %1759 = vmatprep.subr.bf16.mxu0 %v1895_v3 }
 0x2bb   :  { %1761 = vmatpush3.bf16.msra.mxu0 %v1998_v21 }
 0x2bc   :  { %1780 = vmatprep.subr.bf16.mxu0 %v1895_v3 }
 0x315   :  { %v355_v46 = vpop.f32.mrb[2].mxu0 }
 0x316   :  { %v356_v47 = vadd.f32 %v2031_v30, %v355_v46  ;;  %v1509_v48 = vpop.f32.mrb[3].mxu0 }
 0x318   :  { %1847 = vtanh.f32 %v356_v47 }
 0x322   :  { %v1848_v49 = vpop.eup %1847 }
 0x323   :  { %438 = vrot.lane.b32.xlu1 %v1848_v49, %s1898_s1 }
 0x381   :  { %v587_v50 = vpop.f32.mrb[4].mxu0 }
 0x382   :  { %v1550_v51 = vpop.f32.mrb[5].mxu0  ;;  %v591_v53 = vadd.f32 %v1323_v52, %v587_v50 }
 0x384   :  { %1849 = vtanh.f32 %v591_v53 }
 0x38e   :  { %v1850_v56 = vpop.eup %1849 }
 0x395   :  { %v439_v54 = vpop.permute.xlu1 %438 }
 0x396   :  { %v441_v55 = vsel %vm42_vm2, %v1846_v45, %v439_v54 }
 0x397   :  { %1538 = vmatmul.mubr.msk.f32.vlgmr.msra.gmra.mrb[6].mxu1 %vm129_vm3, %v441_v55 }
 0x398   :  { %1764 = vmatpush3.bf16.msra.mxu1 %v1935_v4  ;;  %1578 = vmatprep.mubr.msk.f32.mxu1 %vm1896_vm0, %v1897_v6 }
 0x399   :  { %1765 = vmatprep.subr.bf16.mxu1 %v1895_v3 }
 0x39c   :  { %1767 = vmatpush3.bf16.msra.mxu1 %v1950_v7 }
 0x39d   :  { %1768 = vmatprep.subr.bf16.mxu1 %v1895_v3 }
 0x39f   :  { %1579 = vmatmul.mubr.msk.f32.vlgmr.msra.gmra.mrb[8].mxu1 %vm42_vm2, %v1850_v56 }
 0x3a0   :  { %1770 = vmatpush3.bf16.msra.mxu1 %v1969_v12  ;;  %1597 = vmatprep.mubr.msk.f32.mxu1 %vm1896_vm0, %v1897_v6 }
 0x3a1   :  { %1771 = vmatprep.subr.bf16.mxu1 %v1895_v3 }
 0x3a4   :  { %1773 = vmatpush3.bf16.msra.mxu1 %v1979_v15 }
 0x3a5   :  { %1774 = vmatprep.subr.bf16.mxu1 %v1895_v3 }
 0x3a8   :  { %1776 = vmatpush3.bf16.msra.mxu1 %v1988_v18 }
 0x3a9   :  { %1777 = vmatprep.subr.bf16.mxu1 %v1895_v3 }
 0x3ac   :  { %1779 = vmatpush3.bf16.msra.mxu1 %v1998_v21 }
 0x3ad   :  { %1798 = vmatprep.subr.bf16.mxu1 %v1895_v3 }
 0x46a   :  { %v511_v57 = vpop.f32.mrb[6].mxu1 }
 0x46b   :  { %v512_v58 = vadd.f32 %v2031_v30, %v511_v57  ;;  %v1539_v59 = vpop.f32.mrb[7].mxu1 }
 0x46d   :  { %1851 = vtanh.f32 %v512_v58 }
 0x472   :  { %v743_v60 = vpop.f32.mrb[8].mxu1 }
 0x473   :  { %v1580_v61 = vpop.f32.mrb[9].mxu1  ;;  %v747_v0 = vadd.f32 %v1326_v63, %v743_v60 }
 0x475   :  { %1853 = vtanh.f32 %v747_v0 }
 0x477   :  { %v1852_v62 = vpop.eup %1851 }
 0x478   :  { %594 = vrot.lane.b32.xlu1 %v1852_v62, %s1898_s1 }
 0x47f   :  { %v1854_v5 = vpop.eup %1853 }
 0x4ea   :  { %v595_v1 = vpop.permute.xlu1 %594 }
 0x4eb   :  { %v597_v2 = vsel %vm42_vm2, %v1850_v56, %v595_v1 }
 0x4ec   :  { %1568 = vmatmul.mubr.msk.f32.vlgmr.msra.gmra.mrb[6].mxu0 %vm129_vm3, %v597_v2 }
 0x4ed   :  { %1782 = vmatpush3.bf16.msra.mxu0 %v1935_v4  ;;  %1608 = vmatprep.mubr.msk.f32.mxu0 %vm1896_vm0, %v1897_v6 }
 0x4ee   :  { %1783 = vmatprep.subr.bf16.mxu0 %v1895_v3 }
 0x4f1   :  { %1785 = vmatpush3.bf16.msra.mxu0 %v1950_v7 }
 0x4f2   :  { %1786 = vmatprep.subr.bf16.mxu0 %v1895_v3 }
 0x4f4   :  { %1609 = vmatmul.mubr.msk.f32.vlgmr.msra.gmra.mrb[8].mxu0 %vm42_vm2, %v1854_v5 }
 0x4f5   :  { %1788 = vmatpush3.bf16.msra.mxu0 %v1969_v12  ;;  %1627 = vmatprep.mubr.msk.f32.mxu0 %vm1896_vm0, %v1897_v6 }
 0x4f6   :  { %1789 = vmatprep.subr.bf16.mxu0 %v1895_v3 }
 0x4f9   :  { %1791 = vmatpush3.bf16.msra.mxu0 %v1979_v15 }
 0x4fa   :  { %1792 = vmatprep.subr.bf16.mxu0 %v1895_v3 }
 0x4fd   :  { %1794 = vmatpush3.bf16.msra.mxu0 %v1988_v18 }
 0x4fe   :  { %1795 = vmatprep.subr.bf16.mxu0 %v1895_v3 }
 0x501   :  { %1797 = vmatpush3.bf16.msra.mxu0 %v1998_v21 }
 0x502   :  { %1816 = vmatprep.subr.bf16.mxu0 %v1895_v3 }
 0x5bf   :  { %v667_v8 = vpop.f32.mrb[6].mxu0 }
 0x5c0   :  { %v668_v9 = vadd.f32 %v2031_v30, %v667_v8  ;;  %v1569_v10 = vpop.f32.mrb[7].mxu0 }
 0x5c2   :  { %1855 = vtanh.f32 %v668_v9 }
 0x5c7   :  { %v899_v11 = vpop.f32.mrb[8].mxu0 }
 0x5c8   :  { %v1610_v13 = vpop.f32.mrb[9].mxu0  ;;  %v903_v17 = vadd.f32 %v1329_v16, %v899_v11 }
 0x5ca   :  { %1857 = vtanh.f32 %v903_v17 }
 0x5cc   :  { %v1856_v14 = vpop.eup %1855 }
 0x5cd   :  { %750 = vrot.lane.b32.xlu0 %v1856_v14, %s1898_s1 }
 0x5d4   :  { %v1858_v22 = vpop.eup %1857 }
 0x63f   :  { %v751_v19 = vpop.permute.xlu0 %750 }
 0x640   :  { %v753_v20 = vsel %vm42_vm2, %v1854_v5, %v751_v19 }
 0x641   :  { %1598 = vmatmul.mubr.msk.f32.vlgmr.msra.gmra.mrb[10].mxu1 %vm129_vm3, %v753_v20 }
 0x642   :  { %1800 = vmatpush3.bf16.msra.mxu1 %v1935_v4  ;;  %1638 = vmatprep.mubr.msk.f32.mxu1 %vm1896_vm0, %v1897_v6 }
 0x643   :  { %1801 = vmatprep.subr.bf16.mxu1 %v1895_v3 }
 0x646   :  { %1803 = vmatpush3.bf16.msra.mxu1 %v1950_v7 }
 0x647   :  { %1804 = vmatprep.subr.bf16.mxu1 %v1895_v3 }
 0x649   :  { %1639 = vmatmul.mubr.msk.f32.vlgmr.msra.gmra.mrb[12].mxu1 %vm42_vm2, %v1858_v22 }
 0x64a   :  { %1806 = vmatpush3.bf16.msra.mxu1 %v1969_v12  ;;  %1657 = vmatprep.mubr.msk.f32.mxu1 %vm1896_vm0, %v1897_v6 }
 0x64b   :  { %1807 = vmatprep.subr.bf16.mxu1 %v1895_v3 }
 0x64e   :  { %1809 = vmatpush3.bf16.msra.mxu1 %v1979_v15 }
 0x64f   :  { %1810 = vmatprep.subr.bf16.mxu1 %v1895_v3 }
 0x652   :  { %1812 = vmatpush3.bf16.msra.mxu1 %v1988_v18 }
 0x653   :  { %1813 = vmatprep.subr.bf16.mxu1 %v1895_v3 }
 0x656   :  { %1815 = vmatpush3.bf16.msra.mxu1 %v1998_v21 }
 0x714   :  { %v823_v23 = vpop.f32.mrb[10].mxu1 }
 0x715   :  { %v824_v24 = vadd.f32 %v2031_v30, %v823_v23  ;;  %v1599_v25 = vpop.f32.mrb[11].mxu1 }
 0x717   :  { %1859 = vtanh.f32 %v824_v24 }
 0x71c   :  { %v1055_v26 = vpop.f32.mrb[12].mxu1 }
 0x71d   :  { %v1640_v27 = vpop.f32.mrb[13].mxu1  ;;  %v1059_v31 = vadd.f32 %v1332_v29, %v1055_v26 }
 0x71f   :  { %1861 = vtanh.f32 %v1059_v31 }
 0x721   :  { %v1860_v28 = vpop.eup %1859 }
 0x722   :  { %906 = vrot.lane.b32.xlu1 %v1860_v28, %s1898_s1 }
 0x729   :  { %v1862_v34 = vpop.eup %1861 }
 0x794   :  { %v907_v32 = vpop.permute.xlu1 %906 }
 0x795   :  { %v909_v33 = vsel %vm42_vm2, %v1858_v22, %v907_v32 }
 0x796   :  { %1628 = vmatmul.mubr.msk.f32.vlgmr.msra.gmra.mrb[10].mxu0 %vm129_vm3, %v909_v33 }
 0x797   :  { %1818 = vmatpush3.bf16.msra.mxu0 %v1935_v4  ;;  %1668 = vmatprep.mubr.msk.f32.mxu0 %vm1896_vm0, %v1897_v6 }
 0x798   :  { %1819 = vmatprep.subr.bf16.mxu0 %v1895_v3 }
 0x79b   :  { %1821 = vmatpush3.bf16.msra.mxu0 %v1950_v7 }
 0x79c   :  { %1822 = vmatprep.subr.bf16.mxu0 %v1895_v3 }
 0x79e   :  { %1669 = vmatmul.mubr.msk.f32.vlgmr.msra.gmra.mrb[12].mxu0 %vm42_vm2, %v1862_v34 }
 0x79f   :  { %1824 = vmatpush3.bf16.msra.mxu0 %v1969_v12  ;;  %1687 = vmatprep.mubr.msk.f32.mxu0 %vm1896_vm0, %v1897_v6  ;;  %v1335_v6 = vld [vmem:[%s2189_s0 + $0xe] sm:$0x3]  ;;  %s1899_s0 = smov [#allocation3]  }
 0x7a0   :  { %1825 = vmatprep.subr.bf16.mxu0 %v1895_v3  ;;  %s1306_s29 = sshll.u32 %s1899_s0, 4  ;;  %s1307_s29 = int_to_ptr.vmem [resolvable:$true] %s1306_s29 }
 0x7a1   :  { %s1871_s30 = scalar_lea.vmem %s1307_s29, 32  ;;  %p1876_p1 = scmp.lt.s32.totalorder %s1307_s29, %s1307_s29 }
 0x7a2   :  { %p1872_p0 = scmp.ne.s32.totalorder %s1307_s29, %s1871_s30  ;;  %p1877_p2 = scmp.lt.s32.totalorder %s1871_s30, %s1871_s30 }
 0x7a3   :  { %1827 = vmatpush3.bf16.msra.mxu0 %v1979_v15 }
 0x7a4   :  { %1828 = vmatprep.subr.bf16.mxu0 %v1895_v3  ;;  %p1878_p3 = por %p1877_p2, %p1876_p1 }
 0x7a6   :  { %p1879_p4 = pnand %p1878_p3, %p1872_p0 }
 0x7a7   :  { %1830 = vmatpush3.bf16.msra.mxu0 %v1988_v18 }
 0x7a8   :  { %1831 = vmatprep.subr.bf16.mxu0 %v1895_v3 }
 0x7ab   :  { %1833 = vmatpush3.bf16.msra.mxu0 %v1998_v21 }
 0x869   :  { %v979_v4 = vpop.f32.mrb[10].mxu0 }
 0x86a   :  { %v980_v7 = vadd.f32 %v2031_v30, %v979_v4  ;;  %v1629_v35 = vpop.f32.mrb[11].mxu0 }
 0x86c   :  { %1863 = vtanh.f32 %v980_v7 }
 0x871   :  { %v1211_v12 = vpop.f32.mrb[12].mxu0 }
 0x872   :  { %v1215_v36 = vadd.f32 %v1335_v6, %v1211_v12  ;;  %v1670_v15 = vpop.f32.mrb[13].mxu0 }
 0x874   :  { %1865 = vtanh.f32 %v1215_v36 }
 0x876   :  { %v1864_v37 = vpop.eup %1863 }
 0x877   :  { %1062 = vrot.lane.b32.xlu0 %v1864_v37, %s1898_s1 }
 0x87e   :  { %v1866_v18 = vpop.eup %1865 }
 0x87f   :  { %1297 = vst.msk [vmem:[#allocation2] sm:$0x3] %vm22_vm1, %v1866_v18 }
 0x8e9   :  { %v1063_v3 = vpop.permute.xlu0 %1062 }
 0x8ea   :  { %v1065_v21 = vsel %vm42_vm2, %v1862_v34, %v1063_v3 }
 0x8eb   :  { %1658 = vmatmul.mubr.msk.f32.vlgmr.msra.gmra.mrb[14].mxu1 %vm129_vm3, %v1065_v21 }
 0x9be   :  { %v1135_v38 = vpop.f32.mrb[14].mxu1 }
 0x9bf   :  { %v1136_v39 = vadd.f32 %v2031_v30, %v1135_v38  ;;  %v1659_v40 = vpop.f32.mrb[15].mxu1 }
 0x9c1   :  { %1867 = vtanh.f32 %v1136_v39 }
 0x9cb   :  { %v1868_v41 = vpop.eup %1867 }
 0x9cc   :  { %1218 = vrot.lane.b32.xlu1 %v1868_v41, %s1898_s1 }
 0xa3e   :  { %v1219_v42 = vpop.permute.xlu1 %1218 }
 0xa3f   :  { %v1221_v43 = vsel %vm42_vm2, %v1866_v18, %v1219_v42 }
 0xa40   :  { %1688 = vmatmul.mubr.msk.f32.vlgmr.msra.gmra.mrb[14].mxu0 %vm129_vm3, %v1221_v43 }
 0xb13   :  { %v1291_v44 = vpop.f32.mrb[14].mxu0 }
 0xb14   :  { %v1292_v45 = vadd.f32 %v2031_v30, %v1291_v44  ;;  %v1689_v46 = vpop.f32.mrb[15].mxu0 }
 0xb16   :  { %1869 = vtanh.f32 %v1292_v45 }
 0xb20   :  { %v1870_v47 = vpop.eup %1869 }
 0xb21   :  { %1298 = vst.msk [vmem:[#allocation2 + $0x2] sm:$0x3] %vm22_vm1, %v1870_v47  ;;  %1299 = vst.msk [vmem:[#allocation3] sm:$0x3] %vm22_vm1, %v1870_v47 }
 0xb22   :  { %1882 = shalt.err (!%p1879_p4)
}
 0xb23   :  { %s1883_s6 = scalar_lea.hbm %s2193_s4, 32 }
 0xb24   :  { %p1884_p5 = scmp.ne.s32.totalorder %s2193_s4, %s1883_s6  ;;  %p1887_p6 = scmp.lt.u32.totalorder %s1883_s6, %s2193_s4 }
 0xb26   :  { %p1889_p7 = pnand %p1887_p6, %p1884_p5 }
 0xb28   :  { %1892 = shalt.err (!%p1889_p7)
}
 0xb29   :  { %1309 = dma.vmem_to_hbm [thread:$0]  %s1307_s29, 32, %s2193_s4, [#allocation4]  }
 0xb2a   :  { %1893 = dma.done.wait [#allocation4], 32  }
 0xb2b   :  { %1894 = vsyncadd [#allocation4], 4294967264 }
 0xb2c   :  { %1313 = vsyncpa [#allocation4], 1 }

</bundles_post_ra>
